<compile_context>
chip_gen: v7x
topology: tpu7x:2x2x1
jax: 0.10.0
libtpu: 0.0.40
codegen_flags: <defaults>
</compile_context>

<pallas_src>
import functools
import math

import jax
import jax.numpy as jnp
from jax.experimental import pallas as pl
from jax.experimental.pallas import tpu as pltpu


# ----------------------------------------------------------------------------
# VMEM budgeting
# ----------------------------------------------------------------------------
def _vmem_limits():
    """(vmem_limit_bytes, tile_budget_bytes) derived from the chip generation."""
    try:
        cap = int(pltpu.get_tpu_info().vmem_capacity_bytes)
    except Exception:
        cap = 64 * 1024 * 1024  # conservative default (v7x per-TC VMEM)
    limit = min(int(cap * 0.78), 100 * 1024 * 1024)
    tile_budget = min(int(cap * 0.60), 80 * 1024 * 1024)
    return limit, tile_budget


def _sublane_multiple(itemsize):
    return {4: 8, 2: 16, 1: 32}.get(itemsize, 8)


# ----------------------------------------------------------------------------
# Main fused kernel: pool -> MLP -> gate, one grid step per batch block
# ----------------------------------------------------------------------------
def _se_kernel(x_ref, w1_ref, w2_ref, o_ref, *, inv_hw):
    # x_ref: (BB, C', HW) in the input dtype; weights are (C', H') / (H', C').
    pooled = jnp.sum(x_ref[...], axis=-1, dtype=jnp.float32) * inv_hw   # (BB, C')

    w1 = w1_ref[...].astype(jnp.float32)
    w2 = w2_ref[...].astype(jnp.float32)
    h = jnp.dot(pooled, w1, preferred_element_type=jnp.float32)         # (BB, H')
    h = h * jax.nn.sigmoid(h)                                           # SiLU
    gate = jax.nn.sigmoid(jnp.dot(h, w2,
                                  preferred_element_type=jnp.float32))  # (BB, C')

    # Re-read x for the gate (VMEM loads are cheap; keeps the tile live range short).
    x = x_ref[...]
    o_ref[...] = (x * gate[:, :, None].astype(x.dtype)).astype(o_ref.dtype)


def _pick_bb(Bp, Cp, HW, itemsize, tile_budget):
    """Largest folded-batch block that fits 4x double-buffered tiles in budget."""
    lane_hw = pl.cdiv(HW, 128) * 128
    per_image = Cp * lane_hw * itemsize          # Cp is already sublane-aligned
    bb_max = max(1, tile_budget // (4 * per_image))
    if Bp >= 2:
        bb_max = min(bb_max, pl.cdiv(Bp, 2))     # >= 2 grid steps (v7x megacore)
    bb_max = int(min(bb_max, Bp))
    # Prefer a divisor of Bp (no batch padding) if it's within 2x of the budget max.
    best_div = max(d for d in range(1, bb_max + 1) if Bp % d == 0)
    if best_div * 2 >= bb_max:
        return best_div, Bp
    return bb_max, pl.cdiv(Bp, bb_max) * bb_max


# ----------------------------------------------------------------------------
# Fallback kernels: spatially chunked two-pass path for very large images
# ----------------------------------------------------------------------------
def _pool_kernel(x_ref, sum_ref):
    @pl.when(pl.program_id(1) == 0)
    def _():
        sum_ref[...] = jnp.zeros_like(sum_ref)
    sum_ref[...] += jnp.sum(x_ref[...], axis=-1, keepdims=True, dtype=jnp.float32)


def _gate_kernel(x_ref, g_ref, o_ref):
    x = x_ref[...]
    o_ref[...] = (x * g_ref[...].astype(x.dtype)).astype(o_ref.dtype)


def _pick_fallback_tiles(R, HW, itemsize, sub, tile_budget):
    hw_pad128 = pl.cdiv(HW, 128) * 128
    hwc = min(hw_pad128, 4096)
    while hwc > 128 and 4 * sub * hwc * itemsize > tile_budget:
        hwc = max(128, (hwc // 2) // 128 * 128)
    rb = max(sub, (tile_budget // (4 * hwc * itemsize)) // sub * sub)
    rb = min(rb, pl.cdiv(R, sub) * sub)
    if R > sub:  # try to get >= 2 row blocks so both v7x cores work in pass 1
        rb = min(rb, pl.cdiv(pl.cdiv(R, 2), sub) * sub)
    return rb, hwc


def _se_fallback(x2, w1, w2, B, C, HW, itemsize, sub, tile_budget, vmem_limit):
    """x2: (B*C, HW). Two HBM reads + one write, but always fits VMEM."""
    R = B * C
    rb, hwc = _pick_fallback_tiles(R, HW, itemsize, sub, tile_budget)
    R_pad = pl.cdiv(R, rb) * rb
    HW_pad = pl.cdiv(HW, hwc) * hwc
    xp = x2
    if R_pad != R or HW_pad != HW:
        xp = jnp.pad(x2, ((0, R_pad - R), (0, HW_pad - HW)))

    grid = (R_pad // rb, HW_pad // hwc)

    sums = pl.pallas_call(
        _pool_kernel,
        out_shape=jax.ShapeDtypeStruct((R_pad, 1), jnp.float32),
        grid_spec=pltpu.PrefetchScalarGridSpec(
            num_scalar_prefetch=0,
            grid=grid,
            in_specs=[pl.BlockSpec((rb, hwc), lambda r, h: (r, h))],
            out_specs=pl.BlockSpec((rb, 1), lambda r, h: (r, 0)),
        ),
        compiler_params=pltpu.CompilerParams(
            dimension_semantics=("parallel", "arbitrary"),
            vmem_limit_bytes=vmem_limit),
    )(xp)

    pooled = sums[:R, 0].reshape(B, C) * (1.0 / float(HW))
    h = pooled @ w1.astype(jnp.float32)
    h = h * jax.nn.sigmoid(h)
    gate = jax.nn.sigmoid(h @ w2.astype(jnp.float32))          # (B, C) f32
    g_col = gate.reshape(R, 1).astype(x2.dtype)
    if R_pad != R:
        g_col = jnp.pad(g_col, ((0, R_pad - R), (0, 0)))

    out = pl.pallas_call(
        _gate_kernel,
        out_shape=jax.ShapeDtypeStruct((R_pad, HW_pad), x2.dtype),
        grid_spec=pltpu.PrefetchScalarGridSpec(
            num_scalar_prefetch=0,
            grid=grid,
            in_specs=[pl.BlockSpec((rb, hwc), lambda r, h: (r, h)),
                      pl.BlockSpec((rb, 1), lambda r, h: (r, 0))],
            out_specs=pl.BlockSpec((rb, hwc), lambda r, h: (r, h)),
        ),
        compiler_params=pltpu.CompilerParams(
            dimension_semantics=("parallel", "parallel"),
            vmem_limit_bytes=vmem_limit),
    )(xp, g_col)
    return out[:R, :HW]


# ----------------------------------------------------------------------------
# Wrapper
# ----------------------------------------------------------------------------
def squeeze_excitation(x, w1, w2, *, tile_budget_bytes=None, vmem_limit_bytes=None):
    """x: (B, C, H, W); w1: (C, hidden) = W1^T; w2: (hidden, C) = W2^T."""
    B, C, H, W = x.shape
    hidden = w1.shape[1]
    HW = H * W
    itemsize = jnp.dtype(x.dtype).itemsize
    sub = _sublane_multiple(itemsize)

    vmem_limit, tile_budget = _vmem_limits()
    if vmem_limit_bytes is not None:
        vmem_limit = vmem_limit_bytes
    if tile_budget_bytes is not None:
        tile_budget = tile_budget_bytes

    lane_hw = pl.cdiv(HW, 128) * 128

    # Fold g consecutive images into the channel axis so C' = g*C is a
    # multiple of the sublane count (dense vregs, unmasked stores).
    g = sub // math.gcd(C, sub)
    Cp = C * g
    Hp = hidden * g

    # Fallback: a single (folded) image does not fit VMEM even at BB=1.
    if 4 * Cp * lane_hw * itemsize > tile_budget:
        out2 = _se_fallback(x.reshape(B * C, HW), w1, w2, B, C, HW,
                            itemsize, sub, tile_budget, vmem_limit)
        return out2.reshape(B, C, H, W)

    Bg = pl.cdiv(B, g) * g                 # batch padded to a multiple of g
    Bp = Bg // g                           # folded batch
    bb, Bp_pad = _pick_bb(Bp, Cp, HW, itemsize, tile_budget)
    B_tot = Bp_pad * g                     # total physical batch after padding

    xf = x.reshape(B, C, HW)
    if B_tot != B:
        xf = jnp.pad(xf, ((0, B_tot - B), (0, 0), (0, 0)))
    x3 = xf.reshape(Bp_pad, Cp, HW)        # contiguous merge -> free view

    if g > 1:
        eye = jnp.eye(g, dtype=w1.dtype)
        w1k = jnp.kron(eye, w1)            # (Cp, Hp) block-diagonal
        w2k = jnp.kron(eye, w2)            # (Hp, Cp) block-diagonal
    else:
        w1k, w2k = w1, w2

    kernel = functools.partial(_se_kernel, inv_hw=1.0 / float(HW))
    out3 = pl.pallas_call(
        kernel,
        out_shape=jax.ShapeDtypeStruct((Bp_pad, Cp, HW), x.dtype),
        grid_spec=pltpu.PrefetchScalarGridSpec(
            num_scalar_prefetch=0,
            grid=(Bp_pad // bb,),
            in_specs=[pl.BlockSpec((bb, Cp, HW), lambda b: (b, 0, 0)),
                      pl.BlockSpec((Cp, Hp), lambda b: (0, 0)),
                      pl.BlockSpec((Hp, Cp), lambda b: (0, 0))],
            out_specs=pl.BlockSpec((bb, Cp, HW), lambda b: (b, 0, 0)),
        ),
        compiler_params=pltpu.CompilerParams(
            dimension_semantics=("parallel",),
            vmem_limit_bytes=vmem_limit),
    )(x3, w1k, w2k)

    out = out3.reshape(B_tot, C, HW)[:B].reshape(B, C, H, W)
    return out


# ----------------------------------------------------------------------------
# Reference + tests
# ----------------------------------------------------------------------------
def _reference(x, w1, w2):
    pooled = jnp.mean(x.astype(jnp.float32), axis=(2, 3))        # (B, C)
    h = pooled @ w1.astype(jnp.float32)
    h = h * jax.nn.sigmoid(h)
    g = jax.nn.sigmoid(h @ w2.astype(jnp.float32))
    return (x.astype(jnp.float32) * g[:, :, None, None]).astype(x.dtype)


def _check(out, ref):
    assert out.shape == ref.shape
    assert jnp.allclose(out, ref, atol=2e-5, rtol=1e-4)


if __name__ == "__main__":
    key = jax.random.PRNGKey(0)

    def make(B, C, H, W, key):
        hidden = max(1, int(C * 0.25))
        kx, k1, k2, key = jax.random.split(key, 4)
        x = jax.random.normal(kx, (B, C, H, W), dtype=jnp.float32)
        # PyTorch Linear(dim, hidden).weight is (hidden, dim); we pass transposes.
        w1 = jax.random.normal(k1, (C, hidden), dtype=jnp.float32) * 0.5
        w2 = jax.random.normal(k2, (hidden, C), dtype=jnp.float32) * 0.5
        return x, w1, w2, key

    # Test 1: module config dim=4, shrinkage 0.25 -> hidden=1; small C exercises
    # the channel-fold (g=2) path.
    x, w1, w2, key = make(2, 4, 16, 16, key)
    out = jax.block_until_ready(squeeze_excitation(x, w1, w2))
    _check(out, _reference(x, w1, w2))

    # Test 2: aligned channels, batch blocking with 2 grid steps.
    x, w1, w2, key = make(4, 8, 32, 32, key)
    out = jax.block_until_ready(squeeze_excitation(x, w1, w2))
    _check(out, _reference(x, w1, w2))

    # Test 3: awkward batch size (B=5) -> batch padding path.
    x, w1, w2, key = make(5, 8, 16, 16, key)
    out = jax.block_until_ready(squeeze_excitation(x, w1, w2))
    _check(out, _reference(x, w1, w2))

    # Test 4: force the spatially-chunked two-pass fallback with a tiny budget.
    x, w1, w2, key = make(2, 4, 32, 32, key)
    out = jax.block_until_ready(
        squeeze_excitation(x, w1, w2, tile_budget_bytes=64 * 1024))
    _check(out, _reference(x, w1, w2))

    print("KERNEL_OK")
</pallas_src>

<mosaic_0001>
module attributes {stable_mosaic.version = 11 : i64} {
  func.func @_se_kernel(%arg0: i32, %arg1: memref<1x8x256xf32, #tpu.memory_space<vmem>>, %arg2: memref<8x2xf32, #tpu.memory_space<vmem>>, %arg3: memref<2x8xf32, #tpu.memory_space<vmem>>, %arg4: memref<1x8x256xf32, #tpu.memory_space<vmem>>) attributes {dimension_semantics = [#tpu.dimension_semantics<parallel>], iteration_bounds = array<i64: 1>, scalar_prefetch = 0 : i64, scratch_operands = 0 : i64, tpu.core_type = #tpu.core_type<tc>, window_params = [{transform_indices = @transform_0, window_bounds = array<i64: 1, 8, 256>}, {pipeline_mode = #tpu.pipeline_mode<synchronous>, transform_indices = @transform_1, window_bounds = array<i64: 8, 2>}, {pipeline_mode = #tpu.pipeline_mode<synchronous>, transform_indices = @transform_2, window_bounds = array<i64: 2, 8>}, {transform_indices = @transform_3, window_bounds = array<i64: 1, 8, 256>}]} {
    %c0 = arith.constant 0 : index
    %c0_0 = arith.constant 0 : index
    %c0_1 = arith.constant 0 : index
    %0 = vector.load %arg1[%c0, %c0_0, %c0_1] : memref<1x8x256xf32, #tpu.memory_space<vmem>>, vector<1x8x256xf32>
    %cst = arith.constant dense<0.000000e+00> : vector<1x8xf32>
    %1 = vector.multi_reduction <add>, %0, %cst [2] : vector<1x8x256xf32> to vector<1x8xf32>
    %cst_2 = arith.constant 3.906250e-03 : f32
    %2 = vector.broadcast %cst_2 : f32 to vector<1x8xf32>
    %3 = arith.mulf %1, %2 : vector<1x8xf32>
    %c0_3 = arith.constant 0 : index
    %c0_4 = arith.constant 0 : index
    %4 = vector.load %arg2[%c0_3, %c0_4] : memref<8x2xf32, #tpu.memory_space<vmem>>, vector<8x2xf32>
    %c0_5 = arith.constant 0 : index
    %c0_6 = arith.constant 0 : index
    %5 = vector.load %arg3[%c0_5, %c0_6] : memref<2x8xf32, #tpu.memory_space<vmem>>, vector<2x8xf32>
    %cst_7 = arith.constant dense<0.000000e+00> : vector<1x2xf32>
    %6 = tpu.matmul %3, %4, %cst_7 {dimension_numbers = #tpu.dot_dimension_numbers<[1], [0], [0], [1], [0, 0, 1, 1], [], []>} : vector<1x8xf32>, vector<8x2xf32>, vector<1x2xf32> -> vector<1x2xf32>
    %7 = arith.negf %6 : vector<1x2xf32>
    %8 = math.exp %7 : vector<1x2xf32>
    %cst_8 = arith.constant 1.000000e+00 : f32
    %9 = vector.broadcast %cst_8 : f32 to vector<1x2xf32>
    %10 = arith.addf %9, %8 : vector<1x2xf32>
    %11 = arith.divf %9, %10 : vector<1x2xf32>
    %12 = arith.mulf %6, %11 : vector<1x2xf32>
    %cst_9 = arith.constant dense<0.000000e+00> : vector<1x8xf32>
    %13 = tpu.matmul %12, %5, %cst_9 {dimension_numbers = #tpu.dot_dimension_numbers<[1], [0], [0], [1], [0, 0, 1, 1], [], []>} : vector<1x2xf32>, vector<2x8xf32>, vector<1x8xf32> -> vector<1x8xf32>
    %14 = arith.negf %13 : vector<1x8xf32>
    %15 = math.exp %14 : vector<1x8xf32>
    %cst_10 = arith.constant 1.000000e+00 : f32
    %16 = vector.broadcast %cst_10 : f32 to vector<1x8xf32>
    %17 = arith.addf %16, %15 : vector<1x8xf32>
    %18 = arith.divf %16, %17 : vector<1x8xf32>
    %c0_11 = arith.constant 0 : index
    %c0_12 = arith.constant 0 : index
    %c0_13 = arith.constant 0 : index
    %19 = vector.load %arg1[%c0_11, %c0_12, %c0_13] : memref<1x8x256xf32, #tpu.memory_space<vmem>>, vector<1x8x256xf32>
    %20 = vector.shape_cast %18 : vector<1x8xf32> to vector<1x8x1xf32>
    %21 = vector.broadcast %20 : vector<1x8x1xf32> to vector<1x8x256xf32>
    %22 = arith.mulf %19, %21 : vector<1x8x256xf32>
    %c0_14 = arith.constant 0 : index
    %c0_15 = arith.constant 0 : index
    %c0_16 = arith.constant 0 : index
    %23 = vector.load %arg4[%c0_14, %c0_15, %c0_16] : memref<1x8x256xf32, #tpu.memory_space<vmem>>, vector<1x8x256xf32>
    tpu.vector_store %arg4[%c0_14, %c0_15, %c0_16], %22 {strides = array<i32>} : memref<1x8x256xf32, #tpu.memory_space<vmem>>, vector<1x8x256xf32>,
    return
  }
  func.func @transform_0(%arg0: i32) -> (i32, i32, i32) {
    %c0_i32 = arith.constant 0 : i32
    %c0_i32_0 = arith.constant 0 : i32
    %c0_i32_1 = arith.constant 0 : i32
    return %arg0, %c0_i32, %c0_i32_0 : i32, i32, i32
  }
  func.func @transform_1(%arg0: i32) -> (i32, i32) {
    %c0_i32 = arith.constant 0 : i32
    %c0_i32_0 = arith.constant 0 : i32
    %c0_i32_1 = arith.constant 0 : i32
    return %c0_i32, %c0_i32_0 : i32, i32
  }
  func.func @transform_2(%arg0: i32) -> (i32, i32) {
    %c0_i32 = arith.constant 0 : i32
    %c0_i32_0 = arith.constant 0 : i32
    %c0_i32_1 = arith.constant 0 : i32
    return %c0_i32, %c0_i32_0 : i32, i32
  }
  func.func @transform_3(%arg0: i32) -> (i32, i32, i32) {
    %c0_i32 = arith.constant 0 : i32
    %c0_i32_0 = arith.constant 0 : i32
    %c0_i32_1 = arith.constant 0 : i32
    return %arg0, %c0_i32, %c0_i32_0 : i32, i32, i32
  }
}

</mosaic_0001>

<bundles_post_ra>
// kernel: tpu_custom_call.1
= control target key start
LH: loop header
LB: loop body
LE: loop exit
PB: predicated region body
PF: predicated region fallthrough
CT: control target
= control target key end

     0   :  { %8 = vsyncpa [#allocation3], 0  ;;  %s365_s0 = inlined_call_operand.hbm [shape: f32[1,8,256], index: 0, kind: input, shape index: {}]   ;;  %s366_s1 = inlined_call_operand.vmem [shape: f32[8,2], index: 1, kind: input, shape index: {}]   ;;  %s367_s2 = inlined_call_operand.vmem [shape: f32[2,8], index: 2, kind: input, shape index: {}]   ;;  %s368_s3 = inlined_call_operand.hbm [shape: f32[1,8,256], index: 3, kind: output, shape index: {}]  }
   0x1   :  { %9 = vsyncpa [#allocation4], 0  ;;  %s311_s12 = smov [#allocation2]   ;;  %s263_s16 = scalar_lea.hbm %s365_s0, 256 }
   0x2   :  { %s16_s13 = sshll.u32 %s311_s12, 4  ;;  %p264_p0 = scmp.ne.s32.totalorder %s365_s0, %s263_s16  ;;  %s17_s13 = int_to_ptr.vmem [resolvable:$true] %s16_s13 }
   0x3   :  { %p267_p1 = scmp.lt.u32.totalorder %s263_s16, %s365_s0 }
   0x5   :  { %p269_p2 = pnand %p267_p1, %p264_p0 }
   0x7   :  { %272 = shalt.err (!%p269_p2)
}
   0x8   :  { %s273_s21 = scalar_lea.vmem %s17_s13, 256  ;;  %p278_p4 = scmp.lt.s32.totalorder %s17_s13, %s17_s13 }
   0x9   :  { %p274_p3 = scmp.ne.s32.totalorder %s17_s13, %s273_s21  ;;  %p279_p5 = scmp.lt.s32.totalorder %s273_s21, %s273_s21 }
   0xb   :  { %p280_p6 = por %p279_p5, %p278_p4 }
   0xd   :  { %p281_p7 = pnand %p280_p6, %p274_p3 }
   0xf   :  { %284 = shalt.err (!%p281_p7)
}
  0x10   :  { %19 = dma.hbm_to_vmem [thread:$0]  %s365_s0, 256, %s17_s13, [#allocation3]  }
  0x11   :  { %307 = dma.done.wait [#allocation3], 256  }
  0x12   :  { %308 = vsyncadd [#allocation3], 4294967040  ;;  %v27_v0 = vld [vmem:[#allocation2] sm:$0xff]  ;;  %v28_v1 = vld [vmem:[#allocation2 + $0x8] sm:$0xff]  ;;  %v312_v3 = vmov 0.0   ;;  %vm313_vm0 = vmmov 0   ;;  %v36_v5 = vlaneseq }
  0x13   :  { %v29_v2 = vadd.f32 %v28_v1, %v27_v0  ;;  %241 = vmatprep.subr.mxu0 %v312_v3  ;;  %v33_v4 = vld [vmem:[%s366_s1] sm:$0xff]  ;;  %246 = vmatprep.subr.mxu1 %v312_v3  ;;  %vm42_vm1 = vcmask 64512   ;;  %vm126_vm2 = vcmask 1041408   ;;  %vm122_vm3 = vcmask 15360   ;;  %s314_s1 = smov [#allocation5]  }
  0x14   :  { %242 = vmatpush3.msra.mxu0 %v33_v4  ;;  %243 = vmatprep.mubr.msk.f32.mxu0 %vm313_vm0, %v312_v3  ;;  %v37_v6 = vand.u32 127, %v36_v5  ;;  %v39_v7 = vshrl.u32 %v36_v5, 7  ;;  %v34_v12 = vld [vmem:[%s367_s2] sm:$0x3]  ;;  %s223_s2 = sshll.u32 %s314_s1, 4  ;;  %s224_s2 = int_to_ptr.vmem [resolvable:$true] %s223_s2 }
  0x15   :  { %30 = vadd.xlane.f32.xlu0 %v29_v2  ;;  %248 = vmatprep.mubr.msk.f32.mxu1 %vm313_vm0, %v312_v3  ;;  %s285_s27 = scalar_lea.vmem %s224_s2, 256  ;;  %p290_p9 = scmp.lt.s32.totalorder %s224_s2, %s224_s2 }
  0x16   :  { %v40_v8 = vsub.s32 %v37_v6, %v39_v7  ;;  %247 = vmatpush3.msk.msra.mxu1 %vm126_vm2, %v34_v12  ;;  %v208_v25 = vsub.s32 0, %v39_v7  ;;  %p286_p8 = scmp.ne.s32.totalorder %s224_s2, %s285_s27  ;;  %p291_p10 = scmp.lt.s32.totalorder %s285_s27, %s285_s27 }
  0x18   :  { %p292_p11 = por %p291_p10, %p290_p9 }
  0x1a   :  { %p293_p12 = pnand %p292_p11, %p286_p8 }
  0xa2   :  { %v31_v9 = vpop.xlane.xlu0 %30 }
  0xa3   :  { %v32_v10 = vmul.f32 0.00390625, %v31_v9 }
  0xa5   :  { %v41_v11 = vrot.slane %v32_v10, %v40_v8 }
  0xa7   :  { %244 = vmatmul.mubr.msk.f32.vlgmr.msra.gmra.mrb[0].mxu0 %vm42_vm1, %v41_v11 }
 0x17a   :  { %v111_v13 = vpop.f32.mrb[0].mxu0 }
 0x17b   :  { %v233_v14 = vmul.f32 -1.442695, %v111_v13  ;;  %v245_v15 = vpop.f32.mrb[1].mxu0 }
 0x17d   :  { %255 = vpow2.f32 %v233_v14 }
 0x187   :  { %v256_v16 = vpop.eup %255 }
 0x188   :  { %v118_v17 = vadd.f32 1.0, %v256_v16 }
 0x18a   :  { %257 = vrcp.f32 %v118_v17 }
 0x194   :  { %v258_v18 = vpop.eup %257 }
 0x195   :  { %v121_v19 = vmul.f32 %v258_v18, %v111_v13 }
 0x197   :  { %249 = vmatmul.mubr.msk.f32.vlgmr.msra.gmra.mrb[0].mxu1 %vm122_vm3, %v121_v19 }
 0x26a   :  { %v196_v20 = vpop.f32.mrb[0].mxu1 }
 0x26b   :  { %v236_v21 = vmul.f32 -1.442695, %v196_v20  ;;  %v250_v22 = vpop.f32.mrb[1].mxu1 }
 0x26d   :  { %259 = vpow2.f32 %v236_v21 }
 0x277   :  { %v260_v23 = vpop.eup %259 }
 0x278   :  { %v203_v24 = vadd.f32 1.0, %v260_v23 }
 0x27a   :  { %261 = vrcp.f32 %v203_v24 }
 0x284   :  { %v262_v26 = vpop.eup %261 }
 0x285   :  { %v209_v27 = vrot.slane %v262_v26, %v208_v25 }
 0x287   :  { %211 = vbcast.lane.b32.xlu0 %v209_v27, 256 }
 0x2f9   :  { %v212_v28 = vpop.permute.xlu0 %211 }
 0x2fa   :  { %v213_v29 = vmul.f32 %v212_v28, %v27_v0  ;;  %v214_v30 = vmul.f32 %v212_v28, %v28_v1 }
 0x2fc   :  { %215 = vst [vmem:[#allocation5] sm:$0xff] %v213_v29  ;;  %216 = vst [vmem:[#allocation5 + $0x8] sm:$0xff] %v214_v30 }
 0x2fd   :  { %296 = shalt.err (!%p293_p12)
}
 0x2fe   :  { %s297_s30 = scalar_lea.hbm %s368_s3, 256 }
 0x2ff   :  { %p298_p13 = scmp.ne.s32.totalorder %s368_s3, %s297_s30  ;;  %p301_p0 = scmp.lt.u32.totalorder %s297_s30, %s368_s3 }
 0x301   :  { %p303_p1 = pnand %p301_p0, %p298_p13 }
 0x303   :  { %306 = shalt.err (!%p303_p1)
}
 0x304   :  { %226 = dma.vmem_to_hbm [thread:$0]  %s224_s2, 256, %s368_s3, [#allocation4]  }
 0x305   :  { %309 = dma.done.wait [#allocation4], 256  }
 0x306   :  { %310 = vsyncadd [#allocation4], 4294967040 }
 0x307   :  { %230 = vsyncpa [#allocation3], 1 }
 0x308   :  { %231 = vsyncpa [#allocation4], 1 }

</bundles_post_ra>
